<compile_context>
chip_gen: v7x
topology: tpu7x:2x2x1
jax: 0.10.0
libtpu: 0.0.40
codegen_flags: <defaults>
</compile_context>

<pallas_src>
import jax
import jax.numpy as jnp
from jax import lax
from jax.experimental import pallas as pl
from jax.experimental.pallas import tpu as pltpu


# ----------------------------------------------------------------------------
# Small helpers.
# ----------------------------------------------------------------------------
def _cdiv(a, b):
    return -(-a // b)


def _round_up(x, m):
    return _cdiv(x, m) * m


def _pad_to(a, shape):
    pads = [(0, t - s) for s, t in zip(a.shape, shape)]
    if any(p for _, p in pads):
        return jnp.pad(a, pads)
    return a


def _d_tiling(D, C, acc_rows, *, target_block_bytes=2 << 20, dtype_bytes=4):
    """Tile the D (row) axis of W=(D, C) for streaming.

    Picks the largest 256-multiple tile_d such that both the streamed W block
    (tile_d*C*dtype_bytes) and the f32 accumulator (acc_rows*tile_d*4) stay
    around `target_block_bytes` (~2 MiB: >= 85% of HBM roofline on v6e/v7x,
    trivially inside every generation's scoped-VMEM default when
    double-buffered).  Returns (tile_d, n_chunks, tiles_per_chunk, Dp) where
    Dp = n_chunks * tiles_per_chunk * tile_d >= D is the zero-padded extent;
    n_chunks=2 exposes a "parallel" axis so v7x's two TensorCores split the
    W stream.
    """
    widest = max(C * dtype_bytes, acc_rows * 4)
    tile_d = max(256, (target_block_bytes // widest) // 256 * 256)
    if tile_d >= D:
        tile_d = _round_up(D, 8)          # single block; minimal padding
        return tile_d, 1, 1, tile_d
    n_tiles = _cdiv(D, tile_d)
    # Two megacore chunks only when the padding waste is small.
    n_chunks = 2 if (n_tiles % 2 == 0 or n_tiles >= 7) else 1
    tiles_per_chunk = _cdiv(n_tiles, n_chunks)
    return tile_d, n_chunks, tiles_per_chunk, n_chunks * tiles_per_chunk * tile_d


# ----------------------------------------------------------------------------
# Kernel 1: tiled forward linear layer  y = x @ W.
# ----------------------------------------------------------------------------
def _matmul_kernel(a_ref, b_ref, o_ref, acc_ref):
    @pl.when(pl.program_id(2) == 0)
    def _():
        acc_ref[...] = jnp.zeros_like(acc_ref)

    acc_ref[...] += jnp.dot(
        a_ref[...], b_ref[...], preferred_element_type=jnp.float32
    )

    @pl.when(pl.program_id(2) == pl.num_programs(2) - 1)
    def _():
        o_ref[...] = acc_ref[...].astype(o_ref.dtype)


def linear_forward(x, w, *, tm=128, tn=256, tk=512):
    M, K = x.shape
    K2, N = w.shape
    assert K == K2
    # MXU-friendly tiles; ragged dims are zero-padded (never full-extent).
    tm = min(tm, _round_up(M, 8))
    tn = min(tn, _round_up(N, 128))
    tk = min(tk, _round_up(K, 128))
    Mp, Kp, Np = _round_up(M, tm), _round_up(K, tk), _round_up(N, tn)
    # Small batch: keep >= 2 parallel output blocks so both v7x TCs get work.
    if Mp // tm == 1 and Np // tn == 1 and tn >= 256:
        tn //= 2
        Np = _round_up(N, tn)
    x_p = _pad_to(x, (Mp, Kp))
    w_p = _pad_to(w, (Kp, Np))

    out = pl.pallas_call(
        _matmul_kernel,
        out_shape=jax.ShapeDtypeStruct((Mp, Np), jnp.float32),
        grid_spec=pltpu.PrefetchScalarGridSpec(
            num_scalar_prefetch=0,
            grid=(Mp // tm, Np // tn, Kp // tk),
            in_specs=[
                pl.BlockSpec((tm, tk), lambda i, j, k: (i, k)),
                pl.BlockSpec((tk, tn), lambda i, j, k: (k, j)),
            ],
            out_specs=pl.BlockSpec((tm, tn), lambda i, j, k: (i, j)),
            scratch_shapes=[pltpu.VMEM((tm, tn), jnp.float32)],
        ),
        compiler_params=pltpu.CompilerParams(
            dimension_semantics=("parallel", "parallel", "arbitrary")
        ),
    )(x_p, w_p)
    return out[:M, :N]


# ----------------------------------------------------------------------------
# Kernel 2 (hot path): fused VJP + squared-norm reduction.
#   Given projections V [NB, C] and W [D, C] (UNtransposed), computes
#   sum_elements((V @ W^T)^2) == sum_i ||Jv_i||^2.
#   Grid: (nb_tiles "parallel", D-chunks "parallel", D-tiles "arbitrary");
#   W is streamed once per NB tile (once total for NB <= tile_nb).
# ----------------------------------------------------------------------------
def _vjp_sqnorm_kernel(v_ref, w_ref, out_ref, acc_ref):
    t = pl.program_id(2)

    @pl.when(t == 0)
    def _():
        acc_ref[...] = jnp.zeros_like(acc_ref)

    # (tile_nb, C) . (tile_d, C)^T -> (tile_nb, tile_d); contraction on the C
    # axis of both operands, so W never needs a wrapper-side transpose.
    jv = lax.dot_general(
        v_ref[...],
        w_ref[...],
        dimension_numbers=(((1,), (1,)), ((), ())),
        preferred_element_type=jnp.float32,
    )
    acc_ref[...] += jv * jv            # elementwise, VPU only (no per-step XLU)

    @pl.when(t == pl.num_programs(2) - 1)
    def _():
        total = jnp.sum(acc_ref[...])  # single cross-lane reduce per (nb, chunk)
        out_ref[...] = jnp.full(out_ref.shape, total, dtype=out_ref.dtype)


def vjp_squared_norm(v, w, *, tile_nb=256, target_block_bytes=2 << 20):
    NB, C = v.shape
    D, C2 = w.shape
    assert C == C2
    dtype_bytes = jnp.dtype(w.dtype).itemsize

    # Tile the projection axis (256 fills the v6e/v7x MXU; fine on v5e too)
    # and zero-pad its ragged edge (zero rows contribute 0 to the sum).
    tile_nb = min(tile_nb, _round_up(NB, 8))
    NBp = _round_up(NB, tile_nb)
    nb_tiles = NBp // tile_nb

    tile_d, n_chunks, tiles_per_chunk, Dp = _d_tiling(
        D, C, tile_nb, target_block_bytes=target_block_bytes,
        dtype_bytes=dtype_bytes)

    v_p = _pad_to(v, (NBp, C))
    w_p = _pad_to(w, (Dp, C))

    out = pl.pallas_call(
        _vjp_sqnorm_kernel,
        out_shape=jax.ShapeDtypeStruct((nb_tiles, n_chunks, 8, 128), jnp.float32),
        grid_spec=pltpu.PrefetchScalarGridSpec(
            num_scalar_prefetch=0,
            grid=(nb_tiles, n_chunks, tiles_per_chunk),
            in_specs=[
                pl.BlockSpec((tile_nb, C), lambda nb, c, t: (nb, 0)),
                pl.BlockSpec(
                    (tile_d, C),
                    lambda nb, c, t: (c * tiles_per_chunk + t, 0),
                ),
            ],
            out_specs=pl.BlockSpec((1, 1, 8, 128), lambda nb, c, t: (nb, c, 0, 0)),
            scratch_shapes=[pltpu.VMEM((tile_nb, tile_d), jnp.float32)],
        ),
        compiler_params=pltpu.CompilerParams(
            dimension_semantics=("parallel", "parallel", "arbitrary"),
            vmem_limit_bytes=32 << 20,
        ),
    )(v_p, w_p)
    # Per-(nb tile, chunk) partial sums added in plain JAX.
    return jnp.sum(out[:, :, 0, 0])


# ----------------------------------------------------------------------------
# Kernel 3 (exact mode, n = -1): sum of squares of W, i.e. ||W||_F^2.
# W is presented as (Dp//8, 8, C); the leading axis is reduced with pure vreg
# adds into a small (8, C) accumulator (single XLU reduce at the end).
# ----------------------------------------------------------------------------
def _sumsq_kernel(w_ref, out_ref, acc_ref):
    t = pl.program_id(1)

    @pl.when(t == 0)
    def _():
        acc_ref[...] = jnp.zeros_like(acc_ref)

    wt = w_ref[...].astype(jnp.float32)      # (tile_d//8, 8, C)
    acc_ref[...] += jnp.sum(wt * wt, axis=0)  # leading-axis vreg adds only

    @pl.when(t == pl.num_programs(1) - 1)
    def _():
        total = jnp.sum(acc_ref[...])
        out_ref[...] = jnp.full(out_ref.shape, total, dtype=out_ref.dtype)


def frobenius_squared(w, *, target_block_bytes=2 << 20):
    D, C = w.shape
    dtype_bytes = jnp.dtype(w.dtype).itemsize
    tile_d, n_chunks, tiles_per_chunk, Dp = _d_tiling(
        D, C, 8, target_block_bytes=target_block_bytes, dtype_bytes=dtype_bytes)
    w_p = _pad_to(w, (Dp, C)).reshape(Dp // 8, 8, C)

    out = pl.pallas_call(
        _sumsq_kernel,
        out_shape=jax.ShapeDtypeStruct((n_chunks, 8, 128), jnp.float32),
        grid_spec=pltpu.PrefetchScalarGridSpec(
            num_scalar_prefetch=0,
            grid=(n_chunks, tiles_per_chunk),
            in_specs=[
                pl.BlockSpec(
                    (tile_d // 8, 8, C),
                    lambda c, t: (c * tiles_per_chunk + t, 0, 0),
                ),
            ],
            out_specs=pl.BlockSpec((1, 8, 128), lambda c, t: (c, 0, 0)),
            scratch_shapes=[pltpu.VMEM((8, C), jnp.float32)],
        ),
        compiler_params=pltpu.CompilerParams(
            dimension_semantics=("parallel", "arbitrary"),
            vmem_limit_bytes=32 << 20,
        ),
    )(w_p)
    return jnp.sum(out[:, 0, 0])


# ----------------------------------------------------------------------------
# JacobianReg.forward equivalent (for the linear model y = x @ W).
# ----------------------------------------------------------------------------
def _random_projection(key, B, C, num_proj):
    """torch._random_vector semantics: row-normalized gaussians (ones if C==1).

    TODO(synk): torch's RNG stream is not reproducible in JAX; only the
    distributional semantics are matched.
    """
    if C == 1:
        return jnp.ones((num_proj * B, 1), dtype=jnp.float32)
    v = jax.random.normal(key, (num_proj * B, C), dtype=jnp.float32)
    return v / jnp.linalg.norm(v, axis=1, keepdims=True)


def jacobian_reg(x, y, w, n=1, key=None):
    """Computes (1/2) tr |dy/dx|^2 with `n` random projections (exact if n=-1)."""
    assert n == -1 or n > 0
    B, C = y.shape

    if n == -1:
        # Exact mode: the projections are the C basis vectors repeated over the
        # batch; for y = x @ W the sum telescopes to
        #   J2 = C * sum_ii B*||W[:, ii]||^2 / (C*B) = ||W||_F^2,
        # so W is reduced directly (no redundant (C*B, C) projection block).
        J2 = frobenius_squared(w)
        return 0.5 * J2

    num_proj = n
    v = _random_projection(key, B, C, num_proj)
    ss = vjp_squared_norm(v, w)
    J2 = C * ss / (num_proj * B)
    return 0.5 * J2


if __name__ == "__main__":
    key = jax.random.PRNGKey(0)
    kx, kw, kv = jax.random.split(key, 3)

    # Small, deliberately ragged shapes to exercise the padded tiling paths.
    B, D, C = 4, 300, 96
    x = jax.random.normal(kx, (B, D), dtype=jnp.float32)
    w = jax.random.normal(kw, (D, C), dtype=jnp.float32) / jnp.sqrt(D)

    # Forward model (Pallas tiled matmul) -> y (the torch graph-attached output).
    y = jax.block_until_ready(linear_forward(x, w))
    y_ref = jnp.dot(x, w, precision="highest")
    assert jnp.allclose(y, y_ref, rtol=1e-4, atol=1e-4)

    # n=3 random projections.
    n = 3
    R = jax.block_until_ready(jacobian_reg(x, y, w, n=n, key=kv))
    v_ref = _random_projection(kv, B, C, n)
    jv_ref = jnp.dot(v_ref, w.T, precision="highest")
    R_ref = 0.5 * C * jnp.sum(jv_ref * jv_ref) / (n * B)
    assert jnp.allclose(R, R_ref, rtol=1e-4, atol=1e-4), (R, R_ref)

    # Exact mode n=-1 equals (1/2) ||W||_F^2 for the linear model.
    R_exact = jax.block_until_ready(jacobian_reg(x, y, w, n=-1))
    assert jnp.allclose(R_exact, 0.5 * jnp.sum(w * w), rtol=1e-5, atol=1e-5)

    print("KERNEL_OK")
</pallas_src>

<mosaic_0001>
module attributes {stable_mosaic.version = 11 : i64} {
  func.func @_matmul_kernel(%arg0: i32, %arg1: i32, %arg2: i32, %arg3: memref<8x384xf32, #tpu.memory_space<vmem>>, %arg4: memref<384x128xf32, #tpu.memory_space<vmem>>, %arg5: memref<8x128xf32, #tpu.memory_space<vmem>>, %arg6: memref<8x128xf32, #tpu.memory_space<vmem>>) attributes {dimension_semantics = [#tpu.dimension_semantics<parallel>, #tpu.dimension_semantics<parallel>, #tpu.dimension_semantics<arbitrary>], iteration_bounds = array<i64: 1, 1, 1>, scalar_prefetch = 0 : i64, scratch_operands = 1 : i64, tpu.core_type = #tpu.core_type<tc>, window_params = [{transform_indices = @transform_0, window_bounds = array<i64: 8, 384>}, {transform_indices = @transform_1, window_bounds = array<i64: 384, 128>}, {transform_indices = @transform_2, window_bounds = array<i64: 8, 128>}]} {
    %c0_i32 = arith.constant 0 : i32
    %0 = arith.cmpi eq, %arg2, %c0_i32 : i32
    %1 = arith.extui %0 : i1 to i32
    %c0_i32_0 = arith.constant 0 : i32
    %2 = arith.cmpi ne, %1, %c0_i32_0 : i32
    scf.if %2 {
      %cst_10 = arith.constant 0.000000e+00 : f32
      %12 = vector.broadcast %cst_10 : f32 to vector<8x128xf32>
      %c0_11 = arith.constant 0 : index
      %c0_12 = arith.constant 0 : index
      %13 = vector.load %arg6[%c0_11, %c0_12] : memref<8x128xf32, #tpu.memory_space<vmem>>, vector<8x128xf32>
      tpu.vector_store %arg6[%c0_11, %c0_12], %12 {strides = array<i32>} : memref<8x128xf32, #tpu.memory_space<vmem>>, vector<8x128xf32>,
    } else {
    }
    %c0 = arith.constant 0 : index
    %c0_1 = arith.constant 0 : index
    %3 = vector.load %arg6[%c0, %c0_1] : memref<8x128xf32, #tpu.memory_space<vmem>>, vector<8x128xf32>
    %c0_2 = arith.constant 0 : index
    %c0_3 = arith.constant 0 : index
    %4 = vector.load %arg3[%c0_2, %c0_3] : memref<8x384xf32, #tpu.memory_space<vmem>>, vector<8x384xf32>
    %c0_4 = arith.constant 0 : index
    %c0_5 = arith.constant 0 : index
    %5 = vector.load %arg4[%c0_4, %c0_5] : memref<384x128xf32, #tpu.memory_space<vmem>>, vector<384x128xf32>
    %cst = arith.constant dense<0.000000e+00> : vector<8x128xf32>
    %6 = tpu.matmul %4, %5, %cst {dimension_numbers = #tpu.dot_dimension_numbers<[1], [0], [0], [1], [0, 0, 1, 1], [], []>} : vector<8x384xf32>, vector<384x128xf32>, vector<8x128xf32> -> vector<8x128xf32>
    %7 = arith.addf %3, %6 : vector<8x128xf32>
    %c0_6 = arith.constant 0 : index
    %c0_7 = arith.constant 0 : index
    %8 = vector.load %arg6[%c0_6, %c0_7] : memref<8x128xf32, #tpu.memory_space<vmem>>, vector<8x128xf32>
    tpu.vector_store %arg6[%c0_6, %c0_7], %7 {strides = array<i32>} : memref<8x128xf32, #tpu.memory_space<vmem>>, vector<8x128xf32>,
    %c0_i32_8 = arith.constant 0 : i32
    %9 = arith.cmpi eq, %arg2, %c0_i32_8 : i32
    %10 = arith.extui %9 : i1 to i32
    %c0_i32_9 = arith.constant 0 : i32
    %11 = arith.cmpi ne, %10, %c0_i32_9 : i32
    scf.if %11 {
      %c0_10 = arith.constant 0 : index
      %c0_11 = arith.constant 0 : index
      %12 = vector.load %arg6[%c0_10, %c0_11] : memref<8x128xf32, #tpu.memory_space<vmem>>, vector<8x128xf32>
      %c0_12 = arith.constant 0 : index
      %c0_13 = arith.constant 0 : index
      %13 = vector.load %arg5[%c0_12, %c0_13] : memref<8x128xf32, #tpu.memory_space<vmem>>, vector<8x128xf32>
      tpu.vector_store %arg5[%c0_12, %c0_13], %12 {strides = array<i32>} : memref<8x128xf32, #tpu.memory_space<vmem>>, vector<8x128xf32>,
    } else {
    }
    return
  }
  func.func @transform_0(%arg0: i32, %arg1: i32, %arg2: i32) -> (i32, i32) {
    %c0_i32 = arith.constant 0 : i32
    return %arg0, %arg2 : i32, i32
  }
  func.func @transform_1(%arg0: i32, %arg1: i32, %arg2: i32) -> (i32, i32) {
    %c0_i32 = arith.constant 0 : i32
    return %arg2, %arg1 : i32, i32
  }
  func.func @transform_2(%arg0: i32, %arg1: i32, %arg2: i32) -> (i32, i32) {
    %c0_i32 = arith.constant 0 : i32
    return %arg0, %arg1 : i32, i32
  }
}

</mosaic_0001>

<bundles_post_ra>
// kernel: tpu_custom_call.1
= control target key start
LH: loop header
LB: loop body
LE: loop exit
PB: predicated region body
PF: predicated region fallthrough
CT: control target
= control target key end

     0   :  { %7 = vsyncpa [#allocation4], 0  ;;  %s555_s0 = inlined_call_operand.hbm [shape: f32[8,384], index: 0, kind: input, shape index: {}]   ;;  %s556_s1 = inlined_call_operand.hbm [shape: f32[384,128], index: 1, kind: input, shape index: {}]   ;;  %s557_s2 = inlined_call_operand.hbm [shape: f32[8,128], index: 2, kind: output, shape index: {}]  }
   0x1   :  { %8 = vsyncpa [#allocation7], 0 }
   0x2   :  { %9 = vsyncpa [#allocation5], 0  ;;  %s481_s9 = smov [#allocation3]   ;;  %s482_s11 = smov [#allocation6]  }
   0x3   :  { %s16_s10 = sshll.u32 %s481_s9, 4  ;;  %s25_s12 = sshll.u32 %s482_s11, 4  ;;  %s17_s10 = int_to_ptr.vmem [resolvable:$true] %s16_s10  ;;  %s504_s12 = int_to_ptr.vmem [resolvable:$true] %s25_s12 }
   0x4   :  { %s409_s15 = scalar_lea.hbm %s555_s0, 384 }
   0x5   :  { %p410_p0 = scmp.ne.s32.totalorder %s555_s0, %s409_s15  ;;  %p413_p1 = scmp.lt.u32.totalorder %s409_s15, %s555_s0 }
   0x7   :  { %p415_p2 = pnand %p413_p1, %p410_p0 }
   0x9   :  { %418 = shalt.err (!%p415_p2)
}
   0xa   :  { %s419_s20 = scalar_lea.vmem %s17_s10, 384  ;;  %p424_p4 = scmp.lt.s32.totalorder %s17_s10, %s17_s10 }
   0xb   :  { %p420_p3 = scmp.ne.s32.totalorder %s17_s10, %s419_s20  ;;  %p425_p5 = scmp.lt.s32.totalorder %s419_s20, %s419_s20 }
   0xd   :  { %p426_p6 = por %p425_p5, %p424_p4 }
   0xf   :  { %p427_p7 = pnand %p426_p6, %p420_p3 }
  0x11   :  { %430 = shalt.err (!%p427_p7)
}
  0x12   :  { %19 = dma.hbm_to_vmem [thread:$0]  %s555_s0, 384, %s17_s10, [#allocation4]  }
  0x13   :  { %s431_s25 = scalar_lea.hbm %s556_s1, 6144 }
  0x14   :  { %p432_p8 = scmp.ne.s32.totalorder %s556_s1, %s431_s25  ;;  %p435_p9 = scmp.lt.u32.totalorder %s431_s25, %s556_s1 }
  0x16   :  { %p437_p10 = pnand %p435_p9, %p432_p8 }
  0x18   :  { %440 = shalt.err (!%p437_p10)
}
  0x19   :  { %s441_s30 = scalar_lea.vmem %s504_s12, 6144  ;;  %p446_p12 = scmp.lt.s32.totalorder %s504_s12, %s504_s12 }
  0x1a   :  { %p442_p11 = scmp.ne.s32.totalorder %s504_s12, %s441_s30  ;;  %p447_p13 = scmp.lt.s32.totalorder %s441_s30, %s441_s30 }
  0x1c   :  { %p448_p0 = por %p447_p13, %p446_p12 }
  0x1e   :  { %p449_p1 = pnand %p448_p0, %p442_p11 }
  0x20   :  { %452 = shalt.err (!%p449_p1)
}
  0x21   :  { %s483_s0 = smov 128   ;;  %s484_s3 = smov 8  }
  0x22   :  { %31 = dma.hbm_to_vmem [thread:$0]  %s556_s1, 6144, %s504_s12, [#allocation7], %s483_s0, %s483_s0, %s484_s3  }
  0x23   :  { %475 = dma.done.wait [#allocation4], 384  }
  0x24   :  { %476 = vsyncadd [#allocation4], 4294966912 }
  0x25   :  { %477 = dma.done.wait [#allocation7], 6144  }
  0x26   :  { %478 = vsyncadd [#allocation7], 4294961152  ;;  %v485_v0 = vmov 0.0|0.0   ;;  %vm486_vm0 = vmmov 0   ;;  %v487_v1 = vmov 0.0   ;;  %v63_v2 = vld [vmem:[#allocation6 + $0x80] sm:$0xff] }
  0x27   :  { %377 = vmatprep.subr.bf16.mxu1 %v485_v0  ;;  %342 = vmatprep.mubr.msk.f32.mxu1 %vm486_vm0, %v487_v1  ;;  %v64_v3 = vld [vmem:[#allocation6 + $0x88] sm:$0xff]  ;;  %v47_v4 = vld [vmem:[#allocation6] sm:$0xff]  ;;  %v65_v11 = vld [vmem:[#allocation6 + $0x90] sm:$0xff]  ;;  %s488_s1 = smov [#allocation8]  }
  0x28   :  { %v345_v5 = vpack.c.bf16 %v64_v3, %v63_v2  ;;  %v48_v6 = vld [vmem:[#allocation6 + $0x8] sm:$0xff]  ;;  %v79_v7 = vld [vmem:[#allocation6 + $0x100] sm:$0xff]  ;;  %v66_v12 = vld [vmem:[#allocation6 + $0x98] sm:$0xff]  ;;  %s248_s6 = sshll.u32 %s488_s1, 4  ;;  %s249_s6 = int_to_ptr.vmem [resolvable:$true] %s248_s6 }
  0x29   :  { %v80_v8 = vld [vmem:[#allocation6 + $0x108] sm:$0xff]  ;;  %v347_v9 = vpack.c.bf16 %v48_v6, %v47_v4  ;;  %v49_v13 = vld [vmem:[#allocation6 + $0x10] sm:$0xff]  ;;  %v349_v14 = vpack.c.bf16 %v66_v12, %v65_v11  ;;  %v50_v15 = vld [vmem:[#allocation6 + $0x18] sm:$0xff]  ;;  %s453_s7 = scalar_lea.vmem %s249_s6, 128  ;;  %p458_p3 = scmp.lt.s32.totalorder %s249_s6, %s249_s6 }
  0x2a   :  { %v378_v10 = vpack.c.bf16 %v80_v8, %v79_v7  ;;  %346 = vmatprep.subr.bf16.mxu0 %v345_v5  ;;  %v81_v16 = vld [vmem:[#allocation6 + $0x110] sm:$0xff]  ;;  %v82_v17 = vld [vmem:[#allocation6 + $0x118] sm:$0xff]  ;;  %v351_v18 = vpack.c.bf16 %v50_v15, %v49_v13  ;;  %v67_v20 = vld [vmem:[#allocation6 + $0xa0] sm:$0xff]  ;;  %p454_p2 = scmp.ne.s32.totalorder %s249_s6, %s453_s7  ;;  %p459_p4 = scmp.lt.s32.totalorder %s453_s7, %s453_s7 }
  0x2b   :  { %348 = vmatpush3.bf16.msra.mxu0 %v347_v9  ;;  %v381_v19 = vpack.c.bf16 %v82_v17, %v81_v16  ;;  %v68_v21 = vld [vmem:[#allocation6 + $0xa8] sm:$0xff]  ;;  %v51_v22 = vld [vmem:[#allocation6 + $0x20] sm:$0xff]  ;;  %v69_v27 = vld [vmem:[#allocation6 + $0xb0] sm:$0xff] }
  0x2c   :  { %379 = vmatpush3.bf16.msra.mxu1 %v378_v10  ;;  %350 = vmatprep.subr.bf16.mxu0 %v349_v14  ;;  %v353_v23 = vpack.c.bf16 %v68_v21, %v67_v20  ;;  %v52_v24 = vld [vmem:[#allocation6 + $0x28] sm:$0xff]  ;;  %v83_v25 = vld [vmem:[#allocation6 + $0x120] sm:$0xff]  ;;  %v70_v28 = vld [vmem:[#allocation6 + $0xb8] sm:$0xff]  ;;  %p460_p5 = por %p459_p4, %p458_p3 }
  0x2d   :  { %380 = vmatprep.subr.bf16.mxu1 %v485_v0  ;;  %v84_v26 = vld [vmem:[#allocation6 + $0x128] sm:$0xff]  ;;  %v355_v29 = vpack.c.bf16 %v52_v24, %v51_v22  ;;  %v53_v31 = vld [vmem:[#allocation6 + $0x30] sm:$0xff]  ;;  %v357_v32 = vpack.c.bf16 %v70_v28, %v69_v27  ;;  %v54_v33 = vld [vmem:[#allocation6 + $0x38] sm:$0xff] }
  0x2e   :  { %v384_v30 = vpack.c.bf16 %v84_v26, %v83_v25  ;;  %v85_v34 = vld [vmem:[#allocation6 + $0x130] sm:$0xff]  ;;  %v86_v35 = vld [vmem:[#allocation6 + $0x138] sm:$0xff]  ;;  %v71_v36 = vld [vmem:[#allocation6 + $0xc0] sm:$0xff]  ;;  %v359_v38 = vpack.c.bf16 %v54_v33, %v53_v31  ;;  %p461_p6 = pnand %p460_p5, %p454_p2 }
  0x2f   :  { %352 = vmatpush3.bf16.msra.mxu0 %v351_v18  ;;  %v72_v37 = vld [vmem:[#allocation6 + $0xc8] sm:$0xff]  ;;  %v387_v39 = vpack.c.bf16 %v86_v35, %v85_v34  ;;  %v55_v40 = vld [vmem:[#allocation6 + $0x40] sm:$0xff]  ;;  %v73_v45 = vld [vmem:[#allocation6 + $0xd0] sm:$0xff] }
  0x30   :  { %382 = vmatpush3.bf16.msra.mxu1 %v381_v19  ;;  %354 = vmatprep.subr.bf16.mxu0 %v353_v23  ;;  %v361_v41 = vpack.c.bf16 %v72_v37, %v71_v36  ;;  %v56_v42 = vld [vmem:[#allocation6 + $0x48] sm:$0xff]  ;;  %v87_v43 = vld [vmem:[#allocation6 + $0x140] sm:$0xff]  ;;  %v74_v46 = vld [vmem:[#allocation6 + $0xd8] sm:$0xff] }
  0x31   :  { %383 = vmatprep.subr.bf16.mxu1 %v485_v0  ;;  %v88_v44 = vld [vmem:[#allocation6 + $0x148] sm:$0xff]  ;;  %v45_v47 = vld [vmem:[#allocation3 + $0x8] sm:$0xff]  ;;  %v363_v48 = vpack.c.bf16 %v56_v42, %v55_v40  ;;  %v365_v51 = vpack.c.bf16 %v74_v46, %v73_v45  ;;  %v58_v52 = vld [vmem:[#allocation6 + $0x58] sm:$0xff] }
  0x32   :  { %v390_v49 = vpack.c.bf16 %v88_v44, %v87_v43  ;;  %v57_v50 = vld [vmem:[#allocation6 + $0x50] sm:$0xff]  ;;  %v90_v54 = vld [vmem:[#allocation6 + $0x158] sm:$0xff]  ;;  %v75_v55 = vld [vmem:[#allocation6 + $0xe0] sm:$0xff]  ;;  %159 = vmatprep.mubr.f32.mxu0 %v45_v47 }
  0x33   :  { %356 = vmatpush3.bf16.msra.mxu0 %v355_v29  ;;  %v89_v53 = vld [vmem:[#allocation6 + $0x150] sm:$0xff]  ;;  %v76_v56 = vld [vmem:[#allocation6 + $0xe8] sm:$0xff]  ;;  %v367_v57 = vpack.c.bf16 %v58_v52, %v57_v50  ;;  %v59_v59 = vld [vmem:[#allocation6 + $0x60] sm:$0xff] }
  0x34   :  { %385 = vmatpush3.bf16.msra.mxu1 %v384_v30  ;;  %358 = vmatprep.subr.bf16.mxu0 %v357_v32  ;;  %v393_v58 = vpack.c.bf16 %v90_v54, %v89_v53  ;;  %v369_v60 = vpack.c.bf16 %v76_v56, %v75_v55  ;;  %v60_v61 = vld [vmem:[#allocation6 + $0x68] sm:$0xff]  ;;  %v91_v62 = vld [vmem:[#allocation6 + $0x160] sm:$0xff]  ;;  %v77_v1 = vld [vmem:[#allocation6 + $0xf0] sm:$0xff] }
  0x35   :  { %386 = vmatprep.subr.bf16.mxu1 %v485_v0  ;;  %v92_v63 = vld [vmem:[#allocation6 + $0x168] sm:$0xff]  ;;  %v78_v2 = vld [vmem:[#allocation6 + $0xf8] sm:$0xff]  ;;  %v371_v3 = vpack.c.bf16 %v60_v61, %v59_v59  ;;  %v61_v5 = vld [vmem:[#allocation6 + $0x70] sm:$0xff] }
  0x36   :  { %v396_v4 = vpack.c.bf16 %v92_v63, %v91_v62  ;;  %v373_v6 = vpack.c.bf16 %v78_v2, %v77_v1  ;;  %v62_v7 = vld [vmem:[#allocation6 + $0x78] sm:$0xff]  ;;  %v93_v8 = vld [vmem:[#allocation6 + $0x170] sm:$0xff]  ;;  %v44_v12 = vld [vmem:[#allocation3] sm:$0xff] }
  0x37   :  { %360 = vmatpush3.bf16.msra.mxu0 %v359_v38  ;;  %v94_v9 = vld [vmem:[#allocation6 + $0x178] sm:$0xff]  ;;  %v375_v10 = vpack.c.bf16 %v62_v7, %v61_v5 }
  0x38   :  { %388 = vmatpush3.bf16.msra.mxu1 %v387_v39  ;;  %362 = vmatprep.subr.bf16.mxu0 %v361_v41  ;;  %v399_v11 = vpack.c.bf16 %v94_v9, %v93_v8  ;;  %v46_v13 = vld [vmem:[#allocation3 + $0x10] sm:$0xff] }
  0x39   :  { %389 = vmatprep.subr.bf16.mxu1 %v485_v0 }
  0x3b   :  { %364 = vmatpush3.bf16.msra.mxu0 %v363_v48 }
  0x3c   :  { %391 = vmatpush3.bf16.msra.mxu1 %v390_v49  ;;  %366 = vmatprep.subr.bf16.mxu0 %v365_v51 }
  0x3d   :  { %392 = vmatprep.subr.bf16.mxu1 %v485_v0 }
  0x3f   :  { %368 = vmatpush3.bf16.msra.mxu0 %v367_v57 }
  0x40   :  { %394 = vmatpush3.bf16.msra.mxu1 %v393_v58  ;;  %370 = vmatprep.subr.bf16.mxu0 %v369_v60 }
  0x41   :  { %395 = vmatprep.subr.bf16.mxu1 %v485_v0 }
  0x43   :  { %372 = vmatpush3.bf16.msra.mxu0 %v371_v3 }
  0x44   :  { %397 = vmatpush3.bf16.msra.mxu1 %v396_v4  ;;  %374 = vmatprep.subr.bf16.mxu0 %v373_v6 }
  0x45   :  { %398 = vmatprep.subr.bf16.mxu1 %v485_v0 }
  0x47   :  { %376 = vmatpush3.bf16.msra.mxu0 %v375_v10 }
  0x48   :  { %400 = vmatpush3.bf16.msra.mxu1 %v399_v11 }
  0x4a   :  { %160 = vmatmul.mubr.f32.vlgmr.msra.gmra.mrb[0].mxu0 %v44_v12 }
  0x4b   :  { %343 = vmatmul.mubr.f32.vlgmr.msra.gmra.mrb[0].mxu1 %v46_v13 }
 0x11d   :  { %v290_v14 = vpop.f32.mrb[0].mxu0 }
 0x11e   :  { %v231_v15 = vpop.f32.mrb[0].mxu1  ;;  %v291_v16 = vpop.f32.mrb[1].mxu0 }
 0x11f   :  { %v344_v17 = vpop.f32.mrb[1].mxu1  ;;  %v292_v18 = vadd.f32 %v291_v16, %v290_v14 }
 0x121   :  { %v232_v19 = vadd.f32 %v292_v18, %v231_v15 }
 0x123   :  { %241 = vst [vmem:[#allocation8] sm:$0xff] %v232_v19 }
 0x124   :  { %464 = shalt.err (!%p461_p6)
}
 0x125   :  { %s465_s10 = scalar_lea.hbm %s557_s2, 128 }
 0x126   :  { %p466_p7 = scmp.ne.s32.totalorder %s557_s2, %s465_s10  ;;  %p469_p8 = scmp.lt.u32.totalorder %s465_s10, %s557_s2 }
 0x128   :  { %p471_p9 = pnand %p469_p8, %p466_p7 }
 0x12a   :  { %474 = shalt.err (!%p471_p9)
}
 0x12b   :  { %251 = dma.vmem_to_hbm [thread:$0]  %s249_s6, 128, %s557_s2, [#allocation5]  }
 0x12c   :  { %479 = dma.done.wait [#allocation5], 128  }
 0x12d   :  { %480 = vsyncadd [#allocation5], 4294967168 }
 0x12e   :  { %255 = vsyncpa [#allocation4], 1 }
 0x12f   :  { %256 = vsyncpa [#allocation7], 1 }
 0x130   :  { %257 = vsyncpa [#allocation5], 1 }

</bundles_post_ra>
